<compile_context>
chip_gen: v6e
topology: v6e:2x2x1
jax: 0.10.0
libtpu: 0.0.40
codegen_flags: <defaults>
</compile_context>

<pallas_src>
import functools

import jax
import jax.numpy as jnp
from jax import lax
from jax.experimental import pallas as pl
from jax.experimental.pallas import tpu as pltpu

_SUBLANE = 8
_MIN_TILE = 256  # smallest batch tile worth a grid step


def _round_up(n: int, m: int) -> int:
    return ((n + m - 1) // m) * m


def _mlp_kernel(x_ref, w1_ref, b1_ref, w2_ref, b2_ref, o_ref):
    # fc1: (tB, D) x (H, D) contracted on D -> (tB, H); f32 accumulate on MXU.
    h = lax.dot_general(
        x_ref[...], w1_ref[...],
        dimension_numbers=(((1,), (1,)), ((), ())),
        preferred_element_type=jnp.float32,
    )
    # Bias + ReLU in f32 (VALU work hides under the MXU passes).
    h = jnp.maximum(h + b1_ref[...], 0.0)
    # fc: (tB, H) x (C, H) contracted on H -> (tB, C).
    out = lax.dot_general(
        h.astype(w2_ref.dtype), w2_ref[...],
        dimension_numbers=(((1,), (1,)), ((), ())),
        preferred_element_type=jnp.float32,
    )
    o_ref[...] = (out + b2_ref[...]).astype(o_ref.dtype)


@functools.partial(jax.jit, static_argnames=("block_b", "compute_dtype"))
def simple_classifier_forward(x, w1, b1, w2, b2, *, block_b=4096,
                              compute_dtype=jnp.float32):
    """Forward pass of SimpleClassifier.

    Args:
      x:  (B, input_size) float32
      w1: (hidden_size, input_size) float32   -- PyTorch nn.Linear layout
      b1: (hidden_size,)
      w2: (num_classes, hidden_size)
      b2: (num_classes,)
      block_b: batch tile for the streamed path.
      compute_dtype: matmul input dtype (jnp.bfloat16 halves HBM bytes on v5e).
    Returns:
      (B, num_classes) logits in x.dtype.
    """
    B, D = x.shape
    H = w1.shape[0]
    C = w2.shape[0]
    out_dtype = x.dtype

    xc = x.astype(compute_dtype)
    w1c = w1.astype(compute_dtype)
    w2c = w2.astype(compute_dtype)
    # Biases stay f32; reshape to (1, N) for clean 2-D broadcast in-kernel.
    b1r = b1.astype(jnp.float32).reshape(1, H)
    b2r = b2.astype(jnp.float32).reshape(1, C)

    out_shape = jax.ShapeDtypeStruct((B, C), out_dtype)

    if B < 2 * _MIN_TILE:
        # Small batch: single no-grid invocation, everything VMEM-resident,
        # no per-step pipeline overhead. (Only used where batch is too small
        # to give both v7x TensorCores a useful grid step anyway.)
        vmem = pl.BlockSpec(memory_space=pltpu.MemorySpace.VMEM)
        return pl.pallas_call(
            _mlp_kernel,
            out_shape=out_shape,
            in_specs=[vmem, vmem, vmem, vmem, vmem],
            out_specs=vmem,
        )(xc, w1c, b1r, w2c, b2r)

    # Batch-streamed path: x/out tiles stream through VMEM, weights/biases stay
    # resident (constant index_map). Tile chosen so there are always >= 2 grid
    # steps (megacore sharding on v7x) while capping per-step VMEM.
    tB = min(block_b, _round_up(pl.cdiv(B, 2), _SUBLANE))
    grid = pl.cdiv(B, tB)  # ragged last block handled/masked by Pallas

    return pl.pallas_call(
        _mlp_kernel,
        out_shape=out_shape,
        grid=(grid,),
        in_specs=[
            pl.BlockSpec((tB, D), lambda i: (i, 0)),   # x: streamed over batch
            pl.BlockSpec((H, D), lambda i: (0, 0)),    # w1: resident
            pl.BlockSpec((1, H), lambda i: (0, 0)),    # b1: resident
            pl.BlockSpec((C, H), lambda i: (0, 0)),    # w2: resident
            pl.BlockSpec((1, C), lambda i: (0, 0)),    # b2: resident
        ],
        out_specs=pl.BlockSpec((tB, C), lambda i: (i, 0)),
        compiler_params=pltpu.CompilerParams(
            dimension_semantics=("parallel",),
            vmem_limit_bytes=32 * 1024 * 1024,
        ),
    )(xc, w1c, b1r, w2c, b2r)


if __name__ == "__main__":
    # Shapes implied by the module: x is (batch, input_size),
    # hidden_size = 3 * input_size, num_classes = 10.
    batch = 8
    input_size = 32
    hidden_size = 3 * input_size   # 96
    num_classes = 10

    key = jax.random.PRNGKey(0)
    kx, kw1, kb1, kw2, kb2, kx2 = jax.random.split(key, 6)

    x = jax.random.normal(kx, (batch, input_size), dtype=jnp.float32)

    # Deterministic parameter init (PyTorch-style uniform bounds, synthetic).
    bound1 = 1.0 / (input_size ** 0.5)
    w1 = jax.random.uniform(kw1, (hidden_size, input_size), jnp.float32,
                            -bound1, bound1)
    b1 = jax.random.uniform(kb1, (hidden_size,), jnp.float32, -bound1, bound1)

    bound2 = 1.0 / (hidden_size ** 0.5)
    w2 = jax.random.uniform(kw2, (num_classes, hidden_size), jnp.float32,
                            -bound2, bound2)
    b2 = jax.random.uniform(kb2, (num_classes,), jnp.float32, -bound2, bound2)

    def ref_fn(xx):
        return jnp.maximum(xx @ w1.T + b1, 0.0) @ w2.T + b2

    # Small-batch (single invocation) path.
    out = jax.block_until_ready(simple_classifier_forward(x, w1, b1, w2, b2))
    assert out.shape == (batch, num_classes)
    assert jnp.allclose(out, ref_fn(x), atol=1e-5, rtol=1e-5), "mismatch vs reference"

    # Batch-streamed path: multi-step grid with a ragged last block
    # (520 rows -> 2 blocks of 264, last block masked).
    x_big = jax.random.normal(kx2, (520, input_size), dtype=jnp.float32)
    out_big = jax.block_until_ready(
        simple_classifier_forward(x_big, w1, b1, w2, b2))
    assert out_big.shape == (520, num_classes)
    assert jnp.allclose(out_big, ref_fn(x_big), atol=1e-4, rtol=1e-4), "tiled mismatch"

    print("KERNEL_OK")
</pallas_src>

<mosaic_0001>
module attributes {stable_mosaic.version = 11 : i64} {
  func.func @_mlp_kernel(%arg0: memref<8x32xf32, #tpu.memory_space<vmem>>, %arg1: memref<96x32xf32, #tpu.memory_space<vmem>>, %arg2: memref<1x96xf32, #tpu.memory_space<vmem>>, %arg3: memref<10x96xf32, #tpu.memory_space<vmem>>, %arg4: memref<1x10xf32, #tpu.memory_space<vmem>>, %arg5: memref<8x10xf32, #tpu.memory_space<vmem>>) attributes {dimension_semantics = [], scalar_prefetch = 0 : i64, scratch_operands = 0 : i64, tpu.core_type = #tpu.core_type<tc>} {
    %c0 = arith.constant 0 : index
    %c0_0 = arith.constant 0 : index
    %0 = vector.load %arg0[%c0, %c0_0] : memref<8x32xf32, #tpu.memory_space<vmem>>, vector<8x32xf32>
    %c0_1 = arith.constant 0 : index
    %c0_2 = arith.constant 0 : index
    %1 = vector.load %arg1[%c0_1, %c0_2] : memref<96x32xf32, #tpu.memory_space<vmem>>, vector<96x32xf32>
    %cst = arith.constant dense<0.000000e+00> : vector<8x96xf32>
    %2 = tpu.matmul %0, %1, %cst {dimension_numbers = #tpu.dot_dimension_numbers<[1], [1], [0], [0], [0, 0, 1, 0], [], []>} : vector<8x32xf32>, vector<96x32xf32>, vector<8x96xf32> -> vector<8x96xf32>
    %c0_3 = arith.constant 0 : index
    %c0_4 = arith.constant 0 : index
    %3 = vector.load %arg2[%c0_3, %c0_4] : memref<1x96xf32, #tpu.memory_space<vmem>>, vector<1x96xf32>
    %4 = vector.broadcast %3 : vector<1x96xf32> to vector<8x96xf32>
    %5 = arith.addf %2, %4 : vector<8x96xf32>
    %cst_5 = arith.constant 0.000000e+00 : f32
    %6 = vector.broadcast %cst_5 : f32 to vector<8x96xf32>
    %7 = arith.maximumf %5, %6 : vector<8x96xf32>
    %c0_6 = arith.constant 0 : index
    %c0_7 = arith.constant 0 : index
    %8 = vector.load %arg3[%c0_6, %c0_7] : memref<10x96xf32, #tpu.memory_space<vmem>>, vector<10x96xf32>
    %cst_8 = arith.constant dense<0.000000e+00> : vector<8x10xf32>
    %9 = tpu.matmul %7, %8, %cst_8 {dimension_numbers = #tpu.dot_dimension_numbers<[1], [1], [0], [0], [0, 0, 1, 0], [], []>} : vector<8x96xf32>, vector<10x96xf32>, vector<8x10xf32> -> vector<8x10xf32>
    %c0_9 = arith.constant 0 : index
    %c0_10 = arith.constant 0 : index
    %10 = vector.load %arg4[%c0_9, %c0_10] : memref<1x10xf32, #tpu.memory_space<vmem>>, vector<1x10xf32>
    %11 = vector.broadcast %10 : vector<1x10xf32> to vector<8x10xf32>
    %12 = arith.addf %9, %11 : vector<8x10xf32>
    %c0_11 = arith.constant 0 : index
    %c0_12 = arith.constant 0 : index
    %13 = vector.load %arg5[%c0_11, %c0_12] : memref<8x10xf32, #tpu.memory_space<vmem>>, vector<8x10xf32>
    tpu.vector_store %arg5[%c0_11, %c0_12], %12 {strides = array<i32>} : memref<8x10xf32, #tpu.memory_space<vmem>>, vector<8x10xf32>,
    return
  }
}

</mosaic_0001>

<bundles_post_ra>
// kernel: simple_classifier_forward.1
= control target key start
LH: loop header
LB: loop body
LE: loop exit
PB: predicated region body
PF: predicated region fallthrough
CT: control target
= control target key end

     0   :  { %vm41_vm0 = vcmask 261120   ;;  %v350_v1 = vmov 0.0   ;;  %vm351_vm1 = vmmov 0   ;;  %vm161_vm2 = vcmask 785408   ;;  %s453_s0 = inlined_call_operand.vmem [shape: f32[8,32], index: 0, kind: input, shape index: {}]   ;;  %s454_s1 = inlined_call_operand.vmem [shape: f32[96,32], index: 1, kind: input, shape index: {}]   ;;  %s455_s2 = inlined_call_operand.vmem [shape: f32[1,96], index: 2, kind: input, shape index: {}]   ;;  %s456_s3 = inlined_call_operand.vmem [shape: f32[10,96], index: 3, kind: input, shape index: {}]   ;;  %s457_s4 = inlined_call_operand.vmem [shape: f32[1,10], index: 4, kind: input, shape index: {}]   ;;  %s458_s5 = inlined_call_operand.hbm [shape: f32[8,10], index: 5, kind: output, shape index: {}]  }
   0x1   :  { %v33_v0 = vld [vmem:[%s454_s1 + $0x58] sm:$0xff]  ;;  %291 = vmatprep.subr.mxu0 %v350_v1  ;;  %315 = vmatprep.mubr.msk.f32.mxu0 %vm351_vm1, %v350_v1  ;;  %v32_v2 = vld [vmem:[%s454_s1 + $0x50] sm:$0xff]  ;;  %v153_v3 = vld [vmem:[%s456_s3 + $0x8] sm:$0x3] }
   0x2   :  { %292 = vmatpush3.xpose.msk.msra.mxu0 %vm41_vm0, %v33_v0  ;;  %318 = vmatprep.subr.mxu1 %v350_v1 }
   0x3   :  { %293 = vmatprep.subr.mxu0 %v350_v1  ;;  %322 = vmatprep.mubr.msk.f32.mxu1 %vm351_vm1, %v350_v1 }
   0x4   :  { %319 = vmatpush3.xpose.msk.msra.mxu1 %vm161_vm2, %v153_v3 }
   0x5   :  { %10 = vsyncpa [#allocation3], 0  ;;  %320 = vmatprep.subr.mxu1 %v350_v1  ;;  %v31_v4 = vld [vmem:[%s454_s1 + $0x48] sm:$0xff]  ;;  %v30_v5 = vld [vmem:[%s454_s1 + $0x40] sm:$0xff]  ;;  %s352_s25 = smov [#allocation2]   ;;  %vm241_vm3 = vcmask 80896  }
   0x6   :  { %294 = vmatpush3.xpose.msk.msra.mxu0 %vm41_vm0, %v32_v2  ;;  %v29_v6 = vld [vmem:[%s454_s1 + $0x38] sm:$0xff]  ;;  %v28_v7 = vld [vmem:[%s454_s1 + $0x30] sm:$0xff]  ;;  %v27_v8 = vld [vmem:[%s454_s1 + $0x28] sm:$0xff]  ;;  %s249_s26 = sshll.u32 %s352_s25, 4  ;;  %s250_s26 = int_to_ptr.vmem [resolvable:$true] %s249_s26 }
   0x7   :  { %295 = vmatprep.subr.mxu0 %v350_v1  ;;  %v26_v9 = vld [vmem:[%s454_s1 + $0x20] sm:$0xff]  ;;  %v25_v10 = vld [vmem:[%s454_s1 + $0x18] sm:$0xff]  ;;  %v24_v11 = vld [vmem:[%s454_s1 + $0x10] sm:$0xff]  ;;  %p333_p1 = scmp.lt.s32.totalorder %s250_s26, %s250_s26 }
   0x8   :  { %v23_v12 = vld [vmem:[%s454_s1 + $0x8] sm:$0xff]  ;;  %v22_v13 = vld [vmem:[%s454_s1] sm:$0xff] }
   0x9   :  { %v21_v14 = vld [vmem:[%s453_s0] sm:$0xff] }
   0xa   :  { %296 = vmatpush3.xpose.msk.msra.mxu0 %vm41_vm0, %v31_v4  ;;  %v152_v15 = vld [vmem:[%s456_s3] sm:$0xff]  ;;  %s328_s3 = scalar_lea.vmem %s250_s26, 128 }
   0xb   :  { %297 = vmatprep.subr.mxu0 %v350_v1  ;;  %321 = vmatpush3.xpose.msk.msra.mxu1 %vm161_vm2, %v152_v15  ;;  %v257_v16 = vld [vmem:[%s455_s2] ss:$0 sm:$0xff]  ;;  %p329_p0 = scmp.ne.s32.totalorder %s250_s26, %s328_s3  ;;  %p334_p2 = scmp.lt.s32.totalorder %s328_s3, %s328_s3 }
   0xc   :  { %v271_v21 = vld [vmem:[%s457_s4] ss:$0 sm:$0xff] }
   0xd   :  { %p335_p3 = por %p334_p2, %p333_p1 }
   0xe   :  { %298 = vmatpush3.xpose.msk.msra.mxu0 %vm41_vm0, %v30_v5 }
   0xf   :  { %299 = vmatprep.subr.mxu0 %v350_v1  ;;  %p336_p4 = pnand %p335_p3, %p329_p0 }
  0x12   :  { %300 = vmatpush3.xpose.msk.msra.mxu0 %vm41_vm0, %v29_v6 }
  0x13   :  { %301 = vmatprep.subr.mxu0 %v350_v1 }
  0x16   :  { %302 = vmatpush3.xpose.msk.msra.mxu0 %vm41_vm0, %v28_v7 }
  0x17   :  { %303 = vmatprep.subr.mxu0 %v350_v1 }
  0x1a   :  { %304 = vmatpush3.xpose.msk.msra.mxu0 %vm41_vm0, %v27_v8 }
  0x1b   :  { %305 = vmatprep.subr.mxu0 %v350_v1 }
  0x1e   :  { %306 = vmatpush3.xpose.msk.msra.mxu0 %vm41_vm0, %v26_v9 }
  0x1f   :  { %307 = vmatprep.subr.mxu0 %v350_v1 }
  0x22   :  { %308 = vmatpush3.xpose.msk.msra.mxu0 %vm41_vm0, %v25_v10 }
  0x23   :  { %309 = vmatprep.subr.mxu0 %v350_v1 }
  0x26   :  { %310 = vmatpush3.xpose.msk.msra.mxu0 %vm41_vm0, %v24_v11 }
  0x27   :  { %311 = vmatprep.subr.mxu0 %v350_v1 }
  0x2a   :  { %312 = vmatpush3.xpose.msk.msra.mxu0 %vm41_vm0, %v23_v12 }
  0x2b   :  { %313 = vmatprep.subr.mxu0 %v350_v1 }
  0x2e   :  { %314 = vmatpush3.xpose.msk.msra.mxu0 %vm41_vm0, %v22_v13 }
  0x31   :  { %316 = vmatmul.mubr.msk.f32.vlgmr.msra.gmra.mxu0 %vm41_vm0, %v21_v14 }
  0xf1   :  { %v147_v17 = vpop.f32.mrf.mxu0 }
  0xf2   :  { %v148_v18 = vadd.f32 %v257_v16, %v147_v17 }
  0xf3   :  { %v317_v19 = vpop.f32.mrf.mxu0 }
  0xf4   :  { %v151_v20 = vmax.f32 %v148_v18, 0.0 }
  0xf6   :  { %323 = vmatmul.mubr.msk.f32.vlgmr.msra.gmra.mxu1 %vm161_vm2, %v151_v20 }
 0x1b6   :  { %v237_v22 = vpop.f32.mrf.mxu1 }
 0x1b7   :  { %v238_v23 = vadd.f32 %v271_v21, %v237_v22 }
 0x1b8   :  { %v324_v24 = vpop.f32.mrf.mxu1 }
 0x1b9   :  { %242 = vst.msk [vmem:[#allocation2] sm:$0xff] %vm241_vm3, %v238_v23 }
 0x1ba   :  { %339 = shalt.err (!%p336_p4)
}
 0x1bb   :  { %252 = dma.vmem_to_hbm [thread:$0]  %s250_s26, 128, %s458_s5, [#allocation3]  }
 0x1bc   :  { %348 = dma.done.wait [#allocation3], 128  }
 0x1bd   :  { %349 = vsyncadd [#allocation3], 4294967168 }
 0x1be   :  { %256 = vsyncpa [#allocation3], 1 }

</bundles_post_ra>
